<compile_context>
chip_gen: v7x
topology: tpu7x:2x2x1
jax: 0.10.0
libtpu: 0.0.40
codegen_flags: <defaults>
</compile_context>

<pallas_src>
import functools

import jax
import jax.numpy as jnp
from jax.experimental import pallas as pl

# ----------------------------- config ----------------------------------------
D_MODEL = 32
NUM_HEADS = 4
D_K = D_MODEL // NUM_HEADS
SEQ_LEN = 8
BATCH = 2
LN_EPS = 1e-5  # PyTorch nn.LayerNorm default


# ----------------------------- kernel -----------------------------------------
def _mhsa_kernel(x_ref, mask_ref, w_ref, b_ref, o_ref, *, d_model, num_heads, d_k):
    f32 = jnp.float32
    D = d_model

    x = x_ref[...].astype(f32)        # (N, D)   N = B*L tokens (batch flattened)
    mask = mask_ref[...].astype(f32)  # (N, N)   block-diagonal across batch, pre-scaled by 1/sqrt(dk)
    w = w_ref[...].astype(f32)        # (D, 4D)  [Wq' | Wk' | Wv' | Wfc]
    bias = b_ref[...].astype(f32)     # (1, 4D)  [bq' | bk' | bv' | bfc]

    # Shared LayerNorm statistics: Q/K/V norms see the same x, so mean/var is computed once;
    # the per-stream gamma/beta were folded into the projection weights on the host.
    mu = jnp.mean(x, axis=-1, keepdims=True)
    var = jnp.mean(jnp.square(x - mu), axis=-1, keepdims=True)
    xn = (x - mu) * jax.lax.rsqrt(var + LN_EPS)

    # Fused QKV projection: one (N, D) @ (D, 3D) MXU push.
    qkv = jnp.dot(xn, w[:, :3 * D], preferred_element_type=f32) + bias[:, :3 * D]

    # Start from residual + fc bias; accumulate each head's fc contribution (no concat needed).
    acc = x + bias[:, 3 * D:]
    for h in range(num_heads):                       # static unroll, num_heads = 4
        lo, hi = h * d_k, (h + 1) * d_k
        qh = qkv[:, lo:hi]                           # (N, dk)  -- already carries 1/sqrt(dk)
        kh = qkv[:, D + lo:D + hi]                   # (N, dk)
        vh = qkv[:, 2 * D + lo:2 * D + hi]           # (N, dk)

        # scores = (q @ k^T + mask) / sqrt(dk)  (scale folded into q and mask on the host)
        s = jax.lax.dot_general(qh, kh, (((1,), (1,)), ((), ())),
                                preferred_element_type=f32) + mask   # (N, N)
        s = s - jnp.max(s, axis=-1, keepdims=True)
        p = jnp.exp(s)
        p = p * pl.reciprocal(jnp.sum(p, axis=-1, keepdims=True), approx=True)

        oh = jnp.dot(p, vh, preferred_element_type=f32)              # (N, dk)
        acc = acc + jnp.dot(oh, w[lo:hi, 3 * D:], preferred_element_type=f32)

    o_ref[...] = acc.astype(o_ref.dtype)


# ----------------------------- wrapper -----------------------------------------
def multi_head_self_attention(x, padding_mask, params):
    """x: (B, L, D); padding_mask: (B, L, L) additive mask; params: module-style dict."""
    B, L, D = x.shape
    H, dk = NUM_HEADS, D_K
    scale = 1.0 / (dk ** 0.5)

    # --- host-side folding: (xn*g + b) @ W + c  ==  xn @ (diag(g)W) + (b@W + c) ---
    wq = (params["qg"].reshape(D, 1) * params["wq"]) * scale
    bq = (params["qb"].reshape(1, D) @ params["wq"] + params["bq"].reshape(1, D)) * scale
    wk = params["kg"].reshape(D, 1) * params["wk"]
    bk = params["kb"].reshape(1, D) @ params["wk"] + params["bk"].reshape(1, D)
    wv = params["vg"].reshape(D, 1) * params["wv"]
    bv = params["vb"].reshape(1, D) @ params["wv"] + params["bv"].reshape(1, D)

    w_slab = jnp.concatenate([wq, wk, wv, params["wfc"]], axis=1)                  # (D, 4D) = (32, 128)
    b_slab = jnp.concatenate([bq, bk, bv, params["bfc"].reshape(1, D)], axis=1)    # (1, 4D)

    # --- flatten batch into the token axis; block-diagonal additive mask keeps batches isolated ---
    x2d = x.reshape(B * L, D).astype(jnp.float32)
    big = jnp.full((B * L, B * L), jnp.float32(-1e9), dtype=jnp.float32)
    for b in range(B):
        big = big.at[b * L:(b + 1) * L, b * L:(b + 1) * L].set(padding_mask[b])
    big = big * jnp.float32(scale)   # module semantics: (q@kT + mask) / sqrt(dk)

    kernel = functools.partial(_mhsa_kernel, d_model=D, num_heads=H, d_k=dk)
    out2d = pl.pallas_call(
        kernel,
        out_shape=jax.ShapeDtypeStruct((B * L, D), x.dtype),
        # single invocation (grid=()): whole problem fits in VMEM, no pipeline steps needed
    )(x2d, big, w_slab, b_slab)
    return out2d.reshape(B, L, D)


# ----------------------------- pure-JAX reference -------------------------------
def _reference(x, mask, p):
    def ln(z, g, b):
        mu = jnp.mean(z, -1, keepdims=True)
        var = jnp.mean((z - mu) ** 2, -1, keepdims=True)
        return (z - mu) / jnp.sqrt(var + LN_EPS) * g + b

    B, L, D = x.shape
    q = ln(x, p["qg"], p["qb"]) @ p["wq"] + p["bq"]
    k = ln(x, p["kg"], p["kb"]) @ p["wk"] + p["bk"]
    v = ln(x, p["vg"], p["vb"]) @ p["wv"] + p["bv"]
    q = q.reshape(B, L, NUM_HEADS, D_K).transpose(0, 2, 1, 3)
    k = k.reshape(B, L, NUM_HEADS, D_K).transpose(0, 2, 1, 3)
    v = v.reshape(B, L, NUM_HEADS, D_K).transpose(0, 2, 1, 3)
    s = (jnp.einsum("bhld,bhmd->bhlm", q, k) + mask[:, None]) / (D_K ** 0.5)
    a = jax.nn.softmax(s, axis=-1)
    o = jnp.einsum("bhlm,bhmd->bhld", a, v).transpose(0, 2, 1, 3).reshape(B, L, D)
    return o @ p["wfc"] + p["bfc"] + x


# ----------------------------- main ---------------------------------------------
if __name__ == "__main__":
    key = jax.random.PRNGKey(0)
    keys = jax.random.split(key, 16)

    x = jax.random.normal(keys[0], (BATCH, SEQ_LEN, D_MODEL), dtype=jnp.float32)

    # additive padding mask: 0 for valid, -1e9 for padded positions (last 2 keys of batch 1)
    mask = jnp.zeros((BATCH, SEQ_LEN, SEQ_LEN), dtype=jnp.float32)
    mask = mask.at[1, :, SEQ_LEN - 2:].set(-1e9)

    def lin_w(k):   # (in, out) layout, y = x @ W + b
        return 0.1 * jax.random.normal(k, (D_MODEL, D_MODEL), dtype=jnp.float32)

    def lin_b(k):
        return 0.1 * jax.random.normal(k, (1, D_MODEL), dtype=jnp.float32)

    def ln_gamma(k):
        return 1.0 + 0.1 * jax.random.normal(k, (1, D_MODEL), dtype=jnp.float32)

    def ln_beta(k):
        return 0.1 * jax.random.normal(k, (1, D_MODEL), dtype=jnp.float32)

    params = dict(
        qg=ln_gamma(keys[1]), qb=ln_beta(keys[2]),
        kg=ln_gamma(keys[3]), kb=ln_beta(keys[4]),
        vg=ln_gamma(keys[5]), vb=ln_beta(keys[6]),
        wq=lin_w(keys[7]), bq=lin_b(keys[8]),
        wk=lin_w(keys[9]), bk=lin_b(keys[10]),
        wv=lin_w(keys[11]), bv=lin_b(keys[12]),
        wfc=lin_w(keys[13]), bfc=lin_b(keys[14]),
    )

    out = multi_head_self_attention(x, mask, params)
    out = jax.block_until_ready(out)

    ref = _reference(x, mask, params)
    assert jnp.allclose(out, ref, atol=5e-3, rtol=5e-3), "mismatch vs reference"

    print("KERNEL_OK")
</pallas_src>

<mosaic_0001>
module attributes {stable_mosaic.version = 11 : i64} {
  func.func @_mhsa_kernel(%arg0: memref<16x32xf32, #tpu.memory_space<vmem>>, %arg1: memref<16x16xf32, #tpu.memory_space<vmem>>, %arg2: memref<32x128xf32, #tpu.memory_space<vmem>>, %arg3: memref<1x128xf32, #tpu.memory_space<vmem>>, %arg4: memref<16x32xf32, #tpu.memory_space<vmem>>) attributes {dimension_semantics = [], scalar_prefetch = 0 : i64, scratch_operands = 0 : i64, tpu.core_type = #tpu.core_type<tc>} {
    %c0 = arith.constant 0 : index
    %c0_0 = arith.constant 0 : index
    %0 = vector.load %arg0[%c0, %c0_0] : memref<16x32xf32, #tpu.memory_space<vmem>>, vector<16x32xf32>
    %c0_1 = arith.constant 0 : index
    %c0_2 = arith.constant 0 : index
    %1 = vector.load %arg1[%c0_1, %c0_2] : memref<16x16xf32, #tpu.memory_space<vmem>>, vector<16x16xf32>
    %c0_3 = arith.constant 0 : index
    %c0_4 = arith.constant 0 : index
    %2 = vector.load %arg2[%c0_3, %c0_4] : memref<32x128xf32, #tpu.memory_space<vmem>>, vector<32x128xf32>
    %c0_5 = arith.constant 0 : index
    %c0_6 = arith.constant 0 : index
    %3 = vector.load %arg3[%c0_5, %c0_6] : memref<1x128xf32, #tpu.memory_space<vmem>>, vector<1x128xf32>
    %cst = arith.constant dense<0.000000e+00> : vector<16xf32>
    %4 = vector.multi_reduction <add>, %0, %cst [1] : vector<16x32xf32> to vector<16xf32>
    %5 = vector.shape_cast %4 : vector<16xf32> to vector<16x1xf32>
    %cst_7 = arith.constant 3.200000e+01 : f32
    %6 = vector.broadcast %cst_7 : f32 to vector<16x1xf32>
    %7 = arith.divf %5, %6 : vector<16x1xf32>
    %8 = vector.broadcast %7 : vector<16x1xf32> to vector<16x32xf32>
    %9 = arith.subf %0, %8 : vector<16x32xf32>
    %10 = arith.mulf %9, %9 : vector<16x32xf32>
    %cst_8 = arith.constant dense<0.000000e+00> : vector<16xf32>
    %11 = vector.multi_reduction <add>, %10, %cst_8 [1] : vector<16x32xf32> to vector<16xf32>
    %12 = vector.shape_cast %11 : vector<16xf32> to vector<16x1xf32>
    %cst_9 = arith.constant 3.200000e+01 : f32
    %13 = vector.broadcast %cst_9 : f32 to vector<16x1xf32>
    %14 = arith.divf %12, %13 : vector<16x1xf32>
    %15 = vector.broadcast %7 : vector<16x1xf32> to vector<16x32xf32>
    %16 = arith.subf %0, %15 : vector<16x32xf32>
    %cst_10 = arith.constant 9.99999974E-6 : f32
    %17 = vector.broadcast %cst_10 : f32 to vector<16x1xf32>
    %18 = arith.addf %14, %17 : vector<16x1xf32>
    %19 = math.rsqrt %18 : vector<16x1xf32>
    %20 = vector.broadcast %19 : vector<16x1xf32> to vector<16x32xf32>
    %21 = arith.mulf %16, %20 : vector<16x32xf32>
    %22 = vector.extract_strided_slice %2 {offsets = [0, 0], sizes = [32, 96], strides = [1, 1]} : vector<32x128xf32> to vector<32x96xf32>
    %cst_11 = arith.constant dense<0.000000e+00> : vector<16x96xf32>
    %23 = tpu.matmul %21, %22, %cst_11 {dimension_numbers = #tpu.dot_dimension_numbers<[1], [0], [0], [1], [0, 0, 1, 1], [], []>} : vector<16x32xf32>, vector<32x96xf32>, vector<16x96xf32> -> vector<16x96xf32>
    %24 = vector.extract_strided_slice %3 {offsets = [0, 0], sizes = [1, 96], strides = [1, 1]} : vector<1x128xf32> to vector<1x96xf32>
    %25 = vector.broadcast %24 : vector<1x96xf32> to vector<16x96xf32>
    %26 = arith.addf %23, %25 : vector<16x96xf32>
    %27 = vector.extract_strided_slice %3 {offsets = [0, 96], sizes = [1, 32], strides = [1, 1]} : vector<1x128xf32> to vector<1x32xf32>
    %28 = vector.broadcast %27 : vector<1x32xf32> to vector<16x32xf32>
    %29 = arith.addf %0, %28 : vector<16x32xf32>
    %30 = vector.extract_strided_slice %26 {offsets = [0, 0], sizes = [16, 8], strides = [1, 1]} : vector<16x96xf32> to vector<16x8xf32>
    %31 = vector.extract_strided_slice %26 {offsets = [0, 32], sizes = [16, 8], strides = [1, 1]} : vector<16x96xf32> to vector<16x8xf32>
    %32 = vector.extract_strided_slice %26 {offsets = [0, 64], sizes = [16, 8], strides = [1, 1]} : vector<16x96xf32> to vector<16x8xf32>
    %cst_12 = arith.constant dense<0.000000e+00> : vector<16x16xf32>
    %33 = tpu.matmul %30, %31, %cst_12 {dimension_numbers = #tpu.dot_dimension_numbers<[1], [1], [0], [0], [0, 0, 1, 0], [], []>} : vector<16x8xf32>, vector<16x8xf32>, vector<16x16xf32> -> vector<16x16xf32>
    %34 = arith.addf %33, %1 : vector<16x16xf32>
    %cst_13 = arith.constant dense<0xFF800000> : vector<16xf32>
    %35 = vector.multi_reduction <maximumf>, %34, %cst_13 [1] : vector<16x16xf32> to vector<16xf32>
    %36 = vector.shape_cast %35 : vector<16xf32> to vector<16x1xf32>
    %37 = vector.broadcast %36 : vector<16x1xf32> to vector<16x16xf32>
    %38 = arith.subf %34, %37 : vector<16x16xf32>
    %39 = math.exp %38 : vector<16x16xf32>
    %cst_14 = arith.constant dense<0.000000e+00> : vector<16xf32>
    %40 = vector.multi_reduction <add>, %39, %cst_14 [1] : vector<16x16xf32> to vector<16xf32>
    %41 = vector.shape_cast %40 : vector<16xf32> to vector<16x1xf32>
    %42 = tpu.reciprocal %41 {approx = true} : vector<16x1xf32> -> vector<16x1xf32>
    %43 = vector.broadcast %42 : vector<16x1xf32> to vector<16x16xf32>
    %44 = arith.mulf %39, %43 : vector<16x16xf32>
    %cst_15 = arith.constant dense<0.000000e+00> : vector<16x8xf32>
    %45 = tpu.matmul %44, %32, %cst_15 {dimension_numbers = #tpu.dot_dimension_numbers<[1], [0], [0], [1], [0, 0, 1, 1], [], []>} : vector<16x16xf32>, vector<16x8xf32>, vector<16x8xf32> -> vector<16x8xf32>
    %46 = vector.extract_strided_slice %2 {offsets = [0, 96], sizes = [8, 32], strides = [1, 1]} : vector<32x128xf32> to vector<8x32xf32>
    %cst_16 = arith.constant dense<0.000000e+00> : vector<16x32xf32>
    %47 = tpu.matmul %45, %46, %cst_16 {dimension_numbers = #tpu.dot_dimension_numbers<[1], [0], [0], [1], [0, 0, 1, 1], [], []>} : vector<16x8xf32>, vector<8x32xf32>, vector<16x32xf32> -> vector<16x32xf32>
    %48 = arith.addf %29, %47 : vector<16x32xf32>
    %49 = vector.extract_strided_slice %26 {offsets = [0, 8], sizes = [16, 8], strides = [1, 1]} : vector<16x96xf32> to vector<16x8xf32>
    %50 = vector.extract_strided_slice %26 {offsets = [0, 40], sizes = [16, 8], strides = [1, 1]} : vector<16x96xf32> to vector<16x8xf32>
    %51 = vector.extract_strided_slice %26 {offsets = [0, 72], sizes = [16, 8], strides = [1, 1]} : vector<16x96xf32> to vector<16x8xf32>
    %cst_17 = arith.constant dense<0.000000e+00> : vector<16x16xf32>
    %52 = tpu.matmul %49, %50, %cst_17 {dimension_numbers = #tpu.dot_dimension_numbers<[1], [1], [0], [0], [0, 0, 1, 0], [], []>} : vector<16x8xf32>, vector<16x8xf32>, vector<16x16xf32> -> vector<16x16xf32>
    %53 = arith.addf %52, %1 : vector<16x16xf32>
    %cst_18 = arith.constant dense<0xFF800000> : vector<16xf32>
    %54 = vector.multi_reduction <maximumf>, %53, %cst_18 [1] : vector<16x16xf32> to vector<16xf32>
    %55 = vector.shape_cast %54 : vector<16xf32> to vector<16x1xf32>
    %56 = vector.broadcast %55 : vector<16x1xf32> to vector<16x16xf32>
    %57 = arith.subf %53, %56 : vector<16x16xf32>
    %58 = math.exp %57 : vector<16x16xf32>
    %cst_19 = arith.constant dense<0.000000e+00> : vector<16xf32>
    %59 = vector.multi_reduction <add>, %58, %cst_19 [1] : vector<16x16xf32> to vector<16xf32>
    %60 = vector.shape_cast %59 : vector<16xf32> to vector<16x1xf32>
    %61 = tpu.reciprocal %60 {approx = true} : vector<16x1xf32> -> vector<16x1xf32>
    %62 = vector.broadcast %61 : vector<16x1xf32> to vector<16x16xf32>
    %63 = arith.mulf %58, %62 : vector<16x16xf32>
    %cst_20 = arith.constant dense<0.000000e+00> : vector<16x8xf32>
    %64 = tpu.matmul %63, %51, %cst_20 {dimension_numbers = #tpu.dot_dimension_numbers<[1], [0], [0], [1], [0, 0, 1, 1], [], []>} : vector<16x16xf32>, vector<16x8xf32>, vector<16x8xf32> -> vector<16x8xf32>
    %65 = vector.extract_strided_slice %2 {offsets = [8, 96], sizes = [8, 32], strides = [1, 1]} : vector<32x128xf32> to vector<8x32xf32>
    %cst_21 = arith.constant dense<0.000000e+00> : vector<16x32xf32>
    %66 = tpu.matmul %64, %65, %cst_21 {dimension_numbers = #tpu.dot_dimension_numbers<[1], [0], [0], [1], [0, 0, 1, 1], [], []>} : vector<16x8xf32>, vector<8x32xf32>, vector<16x32xf32> -> vector<16x32xf32>
    %67 = arith.addf %48, %66 : vector<16x32xf32>
    %68 = vector.extract_strided_slice %26 {offsets = [0, 16], sizes = [16, 8], strides = [1, 1]} : vector<16x96xf32> to vector<16x8xf32>
    %69 = vector.extract_strided_slice %26 {offsets = [0, 48], sizes = [16, 8], strides = [1, 1]} : vector<16x96xf32> to vector<16x8xf32>
    %70 = vector.extract_strided_slice %26 {offsets = [0, 80], sizes = [16, 8], strides = [1, 1]} : vector<16x96xf32> to vector<16x8xf32>
    %cst_22 = arith.constant dense<0.000000e+00> : vector<16x16xf32>
    %71 = tpu.matmul %68, %69, %cst_22 {dimension_numbers = #tpu.dot_dimension_numbers<[1], [1], [0], [0], [0, 0, 1, 0], [], []>} : vector<16x8xf32>, vector<16x8xf32>, vector<16x16xf32> -> vector<16x16xf32>
    %72 = arith.addf %71, %1 : vector<16x16xf32>
    %cst_23 = arith.constant dense<0xFF800000> : vector<16xf32>
    %73 = vector.multi_reduction <maximumf>, %72, %cst_23 [1] : vector<16x16xf32> to vector<16xf32>
    %74 = vector.shape_cast %73 : vector<16xf32> to vector<16x1xf32>
    %75 = vector.broadcast %74 : vector<16x1xf32> to vector<16x16xf32>
    %76 = arith.subf %72, %75 : vector<16x16xf32>
    %77 = math.exp %76 : vector<16x16xf32>
    %cst_24 = arith.constant dense<0.000000e+00> : vector<16xf32>
    %78 = vector.multi_reduction <add>, %77, %cst_24 [1] : vector<16x16xf32> to vector<16xf32>
    %79 = vector.shape_cast %78 : vector<16xf32> to vector<16x1xf32>
    %80 = tpu.reciprocal %79 {approx = true} : vector<16x1xf32> -> vector<16x1xf32>
    %81 = vector.broadcast %80 : vector<16x1xf32> to vector<16x16xf32>
    %82 = arith.mulf %77, %81 : vector<16x16xf32>
    %cst_25 = arith.constant dense<0.000000e+00> : vector<16x8xf32>
    %83 = tpu.matmul %82, %70, %cst_25 {dimension_numbers = #tpu.dot_dimension_numbers<[1], [0], [0], [1], [0, 0, 1, 1], [], []>} : vector<16x16xf32>, vector<16x8xf32>, vector<16x8xf32> -> vector<16x8xf32>
    %84 = vector.extract_strided_slice %2 {offsets = [16, 96], sizes = [8, 32], strides = [1, 1]} : vector<32x128xf32> to vector<8x32xf32>
    %cst_26 = arith.constant dense<0.000000e+00> : vector<16x32xf32>
    %85 = tpu.matmul %83, %84, %cst_26 {dimension_numbers = #tpu.dot_dimension_numbers<[1], [0], [0], [1], [0, 0, 1, 1], [], []>} : vector<16x8xf32>, vector<8x32xf32>, vector<16x32xf32> -> vector<16x32xf32>
    %86 = arith.addf %67, %85 : vector<16x32xf32>
    %87 = vector.extract_strided_slice %26 {offsets = [0, 24], sizes = [16, 8], strides = [1, 1]} : vector<16x96xf32> to vector<16x8xf32>
    %88 = vector.extract_strided_slice %26 {offsets = [0, 56], sizes = [16, 8], strides = [1, 1]} : vector<16x96xf32> to vector<16x8xf32>
    %89 = vector.extract_strided_slice %26 {offsets = [0, 88], sizes = [16, 8], strides = [1, 1]} : vector<16x96xf32> to vector<16x8xf32>
    %cst_27 = arith.constant dense<0.000000e+00> : vector<16x16xf32>
    %90 = tpu.matmul %87, %88, %cst_27 {dimension_numbers = #tpu.dot_dimension_numbers<[1], [1], [0], [0], [0, 0, 1, 0], [], []>} : vector<16x8xf32>, vector<16x8xf32>, vector<16x16xf32> -> vector<16x16xf32>
    %91 = arith.addf %90, %1 : vector<16x16xf32>
    %cst_28 = arith.constant dense<0xFF800000> : vector<16xf32>
    %92 = vector.multi_reduction <maximumf>, %91, %cst_28 [1] : vector<16x16xf32> to vector<16xf32>
    %93 = vector.shape_cast %92 : vector<16xf32> to vector<16x1xf32>
    %94 = vector.broadcast %93 : vector<16x1xf32> to vector<16x16xf32>
    %95 = arith.subf %91, %94 : vector<16x16xf32>
    %96 = math.exp %95 : vector<16x16xf32>
    %cst_29 = arith.constant dense<0.000000e+00> : vector<16xf32>
    %97 = vector.multi_reduction <add>, %96, %cst_29 [1] : vector<16x16xf32> to vector<16xf32>
    %98 = vector.shape_cast %97 : vector<16xf32> to vector<16x1xf32>
    %99 = tpu.reciprocal %98 {approx = true} : vector<16x1xf32> -> vector<16x1xf32>
    %100 = vector.broadcast %99 : vector<16x1xf32> to vector<16x16xf32>
    %101 = arith.mulf %96, %100 : vector<16x16xf32>
    %cst_30 = arith.constant dense<0.000000e+00> : vector<16x8xf32>
    %102 = tpu.matmul %101, %89, %cst_30 {dimension_numbers = #tpu.dot_dimension_numbers<[1], [0], [0], [1], [0, 0, 1, 1], [], []>} : vector<16x16xf32>, vector<16x8xf32>, vector<16x8xf32> -> vector<16x8xf32>
    %103 = vector.extract_strided_slice %2 {offsets = [24, 96], sizes = [8, 32], strides = [1, 1]} : vector<32x128xf32> to vector<8x32xf32>
    %cst_31 = arith.constant dense<0.000000e+00> : vector<16x32xf32>
    %104 = tpu.matmul %102, %103, %cst_31 {dimension_numbers = #tpu.dot_dimension_numbers<[1], [0], [0], [1], [0, 0, 1, 1], [], []>} : vector<16x8xf32>, vector<8x32xf32>, vector<16x32xf32> -> vector<16x32xf32>
    %105 = arith.addf %86, %104 : vector<16x32xf32>
    %c0_32 = arith.constant 0 : index
    %c0_33 = arith.constant 0 : index
    %106 = vector.load %arg4[%c0_32, %c0_33] : memref<16x32xf32, #tpu.memory_space<vmem>>, vector<16x32xf32>
    tpu.vector_store %arg4[%c0_32, %c0_33], %105 {strides = array<i32>} : memref<16x32xf32, #tpu.memory_space<vmem>>, vector<16x32xf32>,
    return
  }
}

</mosaic_0001>

<bundles_post_ra>
// kernel: tpu_custom_call.1
= control target key start
LH: loop header
LB: loop body
LE: loop exit
PB: predicated region body
PF: predicated region fallthrough
CT: control target
= control target key end

     0   :  { %9 = vsyncpa [#allocation3], 0  ;;  %s2031_s0 = inlined_call_operand.hbm [shape: f32[16,32], index: 0, kind: input, shape index: {}]   ;;  %s2032_s1 = inlined_call_operand.hbm [shape: f32[16,16], index: 1, kind: input, shape index: {}]   ;;  %s2033_s2 = inlined_call_operand.hbm [shape: f32[32,128], index: 2, kind: input, shape index: {}]   ;;  %s2034_s3 = inlined_call_operand.vmem [shape: f32[1,128], index: 3, kind: input, shape index: {}]   ;;  %s2035_s4 = inlined_call_operand.hbm [shape: f32[16,32], index: 4, kind: output, shape index: {}]  }
   0x1   :  { %10 = vsyncpa [#allocation6], 0 }
   0x2   :  { %11 = vsyncpa [#allocation4], 0  ;;  %s1772_s15 = smov [#allocation5]   ;;  %s1773_s17 = smov [#allocation2]  }
   0x3   :  { %s29_s16 = sshll.u32 %s1772_s15, 4  ;;  %s17_s18 = sshll.u32 %s1773_s17, 4  ;;  %s30_s16 = int_to_ptr.vmem [resolvable:$true] %s29_s16  ;;  %s1815_s18 = int_to_ptr.vmem [resolvable:$true] %s17_s18 }
   0x4   :  { %s1678_s21 = scalar_lea.hbm %s2032_s1, 256 }
   0x5   :  { %p1679_p0 = scmp.ne.s32.totalorder %s2032_s1, %s1678_s21  ;;  %p1682_p1 = scmp.lt.u32.totalorder %s1678_s21, %s2032_s1 }
   0x7   :  { %p1684_p2 = pnand %p1682_p1, %p1679_p0 }
   0x9   :  { %1687 = shalt.err (!%p1684_p2)
}
   0xa   :  { %s1688_s26 = scalar_lea.vmem %s30_s16, 256  ;;  %p1693_p4 = scmp.lt.s32.totalorder %s30_s16, %s30_s16 }
   0xb   :  { %p1689_p3 = scmp.ne.s32.totalorder %s30_s16, %s1688_s26  ;;  %p1694_p5 = scmp.lt.s32.totalorder %s1688_s26, %s1688_s26 }
   0xd   :  { %p1695_p6 = por %p1694_p5, %p1693_p4 }
   0xf   :  { %p1696_p7 = pnand %p1695_p6, %p1689_p3 }
  0x11   :  { %1699 = shalt.err (!%p1696_p7)
}
  0x12   :  { %s1774_s27 = smov 128   ;;  %s1775_s28 = smov 8  }
  0x13   :  { %35 = dma.hbm_to_vmem [thread:$0]  %s2032_s1, 256, %s30_s16, [#allocation6], %s1774_s27, %s1774_s27, %s1775_s28  }
  0x14   :  { %s1700_s7 = scalar_lea.hbm %s2031_s0, 256 }
  0x15   :  { %p1701_p8 = scmp.ne.s32.totalorder %s2031_s0, %s1700_s7  ;;  %p1704_p9 = scmp.lt.u32.totalorder %s1700_s7, %s2031_s0 }
  0x17   :  { %p1706_p10 = pnand %p1704_p9, %p1701_p8 }
  0x19   :  { %1709 = shalt.err (!%p1706_p10)
}
  0x1a   :  { %s1710_s12 = scalar_lea.vmem %s1815_s18, 256  ;;  %p1715_p12 = scmp.lt.s32.totalorder %s1815_s18, %s1815_s18 }
  0x1b   :  { %p1711_p11 = scmp.ne.s32.totalorder %s1815_s18, %s1710_s12  ;;  %p1716_p13 = scmp.lt.s32.totalorder %s1710_s12, %s1710_s12 }
  0x1d   :  { %p1717_p0 = por %p1716_p13, %p1715_p12 }
  0x1f   :  { %p1718_p1 = pnand %p1717_p0, %p1711_p11 }
  0x21   :  { %1721 = shalt.err (!%p1718_p1)
}
  0x22   :  { %23 = dma.hbm_to_vmem [thread:$0]  %s2031_s0, 256, %s1815_s18, [#allocation3], %s1774_s27, %s1774_s27, %s1775_s28  }
  0x23   :  { %s1776_s14 = smov [#allocation7]   ;;  %s1722_s19 = scalar_lea.hbm %s2033_s2, 512 }
  0x24   :  { %s41_s15 = sshll.u32 %s1776_s14, 4  ;;  %p1723_p2 = scmp.ne.s32.totalorder %s2033_s2, %s1722_s19  ;;  %s42_s15 = int_to_ptr.vmem [resolvable:$true] %s41_s15 }
  0x25   :  { %p1726_p3 = scmp.lt.u32.totalorder %s1722_s19, %s2033_s2 }
  0x27   :  { %p1728_p4 = pnand %p1726_p3, %p1723_p2 }
  0x29   :  { %1731 = shalt.err (!%p1728_p4)
}
  0x2a   :  { %s1732_s24 = scalar_lea.vmem %s42_s15, 512  ;;  %p1737_p6 = scmp.lt.s32.totalorder %s42_s15, %s42_s15 }
  0x2b   :  { %p1733_p5 = scmp.ne.s32.totalorder %s42_s15, %s1732_s24  ;;  %p1738_p7 = scmp.lt.s32.totalorder %s1732_s24, %s1732_s24 }
  0x2d   :  { %p1739_p8 = por %p1738_p7, %p1737_p6 }
  0x2f   :  { %p1740_p9 = pnand %p1739_p8, %p1733_p5 }
  0x31   :  { %1743 = shalt.err (!%p1740_p9)
}
  0x32   :  { %47 = dma.hbm_to_vmem [thread:$0]  %s2033_s2, 512, %s42_s15, [#allocation6], %s1774_s27, %s1774_s27, %s1775_s28  }
  0x33   :  { %1766 = dma.done.wait [#allocation3], 256  }
  0x34   :  { %1767 = vsyncadd [#allocation3], 4294967040 }
  0x35   :  { %1768 = dma.done.wait [#allocation6], 768  }
  0x36   :  { %1769 = vsyncadd [#allocation6], 4294966528  ;;  %vm68_vm0 = vcmask 261120   ;;  %v1867_v0 = vld [vmem:[#allocation2] sm:$0xff]  ;;  %v1869_v1 = vld [vmem:[#allocation2 + $0x8] sm:$0xff]  ;;  %vm194_vm1 = vcmask 64512  }
  0x37   :  { %v69_v2 = vsel %vm68_vm0, %v1867_v0, 0.0  ;;  %v72_v3 = vsel %vm68_vm0, %v1869_v1, 0.0  ;;  %v1879_v14 = vld [vmem:[#allocation7] sm:$0xff]  ;;  %v1881_v15 = vld [vmem:[#allocation7 + $0x8] sm:$0xff]  ;;  %v1883_v16 = vld [vmem:[#allocation7 + $0x10] sm:$0xff]  ;;  %s1777_s26 = smov 96  }
  0x38   :  { %70 = vadd.xlane.f32.xlu0 %v69_v2  ;;  %v1528_v17 = vpack.c.bf16 %v1881_v15, %v1879_v14  ;;  %v1887_v18 = vld [vmem:[#allocation7 + $0x18] sm:$0xff]  ;;  %v1896_v30 = vld [vmem:[%s2034_s3] ss:$0 sm:$0xff]  ;;  %s1778_s3 = smov 88   ;;  %s1779_s29 = smov 120   ;;  %vm1918_vm2 = vmpackc.low %vm194_vm1, %vm194_vm1  ;;  %vm278_vm3 = vcmask 130048  }
  0x39   :  { %v1532_v19 = vpack.c.bf16 %v1887_v18, %v1883_v16  ;;  %s1780_s30 = smov 112   ;;  %v1928_v41 = vld [vmem:[#allocation5] sm:$0xff]  ;;  %v1930_v43 = vld [vmem:[#allocation5 + $0x8] sm:$0xff]  ;;  %s1781_s5 = smov 64  }
  0x3a   :  { %1529 = vmatprep.subr.bf16.mxu0 %v1528_v17  ;;  %s1782_s6 = smov 80   ;;  %s1783_s7 = smov 56  }
  0x3b   :  { %1531 = vmatpush3.bf16.msra.mxu0 %v1528_v17  ;;  %s1784_s8 = smov 72   ;;  %s1785_s9 = smov 104  }
  0x3c   :  { %73 = vadd.xlane.f32.xlu0 %v72_v3  ;;  %1533 = vmatprep.subr.bf16.mxu0 %v1532_v19  ;;  %s1786_s10 = smov 32   ;;  %s1787_s11 = smov 48  }
  0x3d   :  { %s1788_s12 = smov 40   ;;  %s1789_s1 = smov [#allocation8]  }
  0x3e   :  { %s1343_s13 = sshll.u32 %s1789_s1, 4  ;;  %s1344_s13 = int_to_ptr.vmem [resolvable:$true] %s1343_s13 }
  0x3f   :  { %1535 = vmatpush3.bf16.msra.mxu0 %v1532_v19  ;;  %s1744_s14 = scalar_lea.vmem %s1344_s13, 256  ;;  %p1749_p11 = scmp.lt.s32.totalorder %s1344_s13, %s1344_s13 }
  0x40   :  { %p1745_p10 = scmp.ne.s32.totalorder %s1344_s13, %s1744_s14  ;;  %p1750_p12 = scmp.lt.s32.totalorder %s1744_s14, %s1744_s14 }
  0x42   :  { %p1751_p13 = por %p1750_p12, %p1749_p11 }
  0x44   :  { %p1752_p0 = pnand %p1751_p13, %p1745_p10 }
  0xc5   :  { %v71_v4 = vpop.xlane.xlu0 %70 }
  0xc6   :  { %v76_v5 = vmul.f32 0.03125, %v71_v4 }
  0xc8   :  { %v78_v6 = vsub.f32 %v1867_v0, %v76_v5 }
  0xc9   :  { %v74_v7 = vpop.xlane.xlu0 %73 }
  0xca   :  { %v77_v8 = vmul.f32 0.03125, %v74_v7  ;;  %v80_v9 = vmul.f32 %v78_v6, %v78_v6 }
  0xcc   :  { %v79_v10 = vsub.f32 %v1869_v1, %v77_v8  ;;  %v82_v11 = vsel %vm68_vm0, %v80_v9, 0.0 }
  0xcd   :  { %83 = vadd.xlane.f32.xlu1 %v82_v11 }
  0xce   :  { %v81_v12 = vmul.f32 %v79_v10, %v79_v10 }
  0xd0   :  { %v85_v13 = vsel %vm68_vm0, %v81_v12, 0.0 }
  0xd1   :  { %86 = vadd.xlane.f32.xlu1 %v85_v13 }
 0x15a   :  { %v84_v20 = vpop.xlane.xlu1 %83 }
 0x15b   :  { %v88_v21 = vmul.f32 0.03125, %v84_v20 }
 0x15d   :  { %v90_v22 = vadd.f32 1e-05, %v88_v21 }
 0x15e   :  { %v87_v23 = vpop.xlane.xlu1 %86 }
 0x15f   :  { %1642 = vrsqrt.f32 %v90_v22  ;;  %v89_v24 = vmul.f32 0.03125, %v87_v23 }
 0x161   :  { %v91_v25 = vadd.f32 1e-05, %v89_v24 }
 0x163   :  { %1644 = vrsqrt.f32 %v91_v25 }
 0x169   :  { %v1643_v26 = vpop.eup %1642 }
 0x16a   :  { %v94_v27 = vmul.f32 %v1643_v26, %v78_v6 }
 0x16c   :  { %1449 = vmatprep.mubr.msk.f32.mxu0 %vm68_vm0, %v94_v27 }
 0x16d   :  { %v1645_v28 = vpop.eup %1644 }
 0x16e   :  { %v95_v29 = vmul.f32 %v1645_v28, %v79_v10 }
 0x170   :  { %1450 = vmatmul.mubr.msk.f32.vlgmr.msra.gmra.mrb[0].mxu0 %vm68_vm0, %v95_v29 }
 0x243   :  { %v1451_v31 = vpop.f32.mrb[0].mxu0 }
 0x244   :  { %v1899_v32 = vadd.f32 %v1451_v31, %v1896_v30  ;;  %v174_v33 = vpop.f32.mrb[1].mxu0 }
 0x245   :  { %v1902_v34 = vadd.f32 %v1896_v30, %v174_v33 }
 0x247   :  { %1456 = vmatprep.mubr.msk.f32.mxu1 %vm194_vm1, %v1902_v34  ;;  %v1908_v35 = vpack.i.bf16 %v1899_v32, %v1902_v34 }
 0x249   :  { %1603 = vrot.lane.b32.xlu0 %v1908_v35, %s1777_s26 }
 0x24d   :  { %1613 = vrot.lane.b32.xlu0 %v1908_v35, %s1778_s3 }
 0x251   :  { %475 = vrot.lane.b32.xlu0 %v1902_v34, %s1779_s29 }
 0x255   :  { %477 = vrot.lane.b32.xlu0 %v1899_v32, %s1779_s29 }
 0x259   :  { %762 = vrot.lane.b32.xlu0 %v1902_v34, %s1780_s30 }
 0x2bb   :  { %v1604_v36 = vpop.permute.xlu0 %1603 }
 0x2bc   :  { %v1606_v37 = vunpack.i.h.bf16 %v1604_v36  ;;  %v1605_v38 = vunpack.i.l.bf16 %v1604_v36 }
 0x2be   :  { %v1536_v40 = vpack.c.bf16 %v1606_v37, %v1605_v38 }
 0x2bf   :  { %v1614_v61 = vpop.permute.xlu0 %1613 }
 0x2c0   :  { %1538 = vmatprep.subr.msk.bf16.mxu1 %vm1918_vm2, %v1536_v40  ;;  %v1616_v63 = vunpack.i.h.bf16 %v1614_v61  ;;  %v1615_v2 = vunpack.i.l.bf16 %v1614_v61 }
 0x2c1   :  { %1541 = vmatpush3.bf16.xpose.msk.msra.mxu1 %vm1918_vm2, %v1536_v40 }
 0x2c2   :  { %v1546_v6 = vpack.c.bf16 %v1616_v63, %v1615_v2 }
 0x2c3   :  { %v476_v12 = vpop.permute.xlu0 %475 }
 0x2c7   :  { %v478_v20 = vpop.permute.xlu0 %477 }
 0x2c8   :  { %1457 = vmatmul.mubr.msk.f32.vlgmr.msra.gmra.mrb[0].mxu1 %vm194_vm1, %v1899_v32 }
 0x2cb   :  { %v763_v21 = vpop.permute.xlu0 %762 }
 0x39b   :  { %v1458_v42 = vpop.f32.mrb[0].mxu1 }
 0x39c   :  { %v269_v44 = vpop.f32.mrb[1].mxu1  ;;  %v275_v46 = vadd.f32 %v1458_v42, %v1930_v43 }
 0x39d   :  { %v270_v45 = vadd.f32 %v269_v44, %v1928_v41 }
 0x39e   :  { %v282_v48 = vsel %vm278_vm3, %v275_v46, -inf }
 0x39f   :  { %v279_v47 = vsel %vm278_vm3, %v270_v45, -inf }
 0x3a0   :  { %280 = vmax.xlane.f32.xlu1 %v279_v47 }
 0x3a4   :  { %283 = vmax.xlane.f32.xlu1 %v282_v48 }
 0x42d   :  { %v281_v49 = vpop.xlane.xlu1 %280 }
 0x42e   :  { %v285_v50 = vsub.f32 %v270_v45, %v281_v49 }
 0x430   :  { %v287_v53 = vmul.f32 1.442695, %v285_v50 }
 0x431   :  { %v284_v51 = vpop.xlane.xlu1 %283 }
 0x432   :  { %v286_v52 = vsub.f32 %v275_v46, %v284_v51 }
 0x434   :  { %v289_v54 = vmul.f32 1.442695, %v286_v52 }
 0x436   :  { %1646 = vpow2.f32 %v289_v54 }
 0x437   :  { %1648 = vpow2.f32 %v287_v53 }
 0x440   :  { %v1647_v55 = vpop.eup %1646 }
 0x441   :  { %v294_v56 = vsel %vm278_vm3, %v1647_v55, 0.0  ;;  %v1649_v57 = vpop.eup %1648 }
 0x442   :  { %295 = vadd.xlane.f32.xlu1 %v294_v56  ;;  %v291_v58 = vsel %vm278_vm3, %v1649_v57, 0.0 }
 0x446   :  { %292 = vadd.xlane.f32.xlu1 %v291_v58 }
 0x457   :  { %1608 = vrot.lane.b32.xlu1 %v1908_v35, %s1781_s5 }
 0x45b   :  { %1618 = vrot.lane.b32.xlu1 %v1908_v35, %s1782_s6 }
 0x45f   :  { %764 = vrot.lane.b32.xlu1 %v1899_v32, %s1780_s30 }
 0x4cf   :  { %v296_v59 = vpop.xlane.xlu1 %295 }
 0x4d0   :  { %1650 = vrcp.f32 %v296_v59 }
 0x4d3   :  { %v293_v60 = vpop.xlane.xlu1 %292 }
 0x4d4   :  { %1652 = vrcp.f32 %v293_v60 }
 0x4d7   :  { %v1609_v62 = vpop.permute.xlu1 %1608 }
 0x4d8   :  { %v1611_v3 = vunpack.i.h.bf16 %v1609_v62  ;;  %v1610_v4 = vunpack.i.l.bf16 %v1609_v62 }
 0x4da   :  { %v1542_v5 = vpack.c.bf16 %v1611_v3, %v1610_v4  ;;  %v1651_v7 = vpop.eup %1650 }
 0x4db   :  { %v1619_v9 = vpop.permute.xlu1 %1618  ;;  %v300_v11 = vmul.f32 %v1651_v7, %v1647_v55 }
 0x4dc   :  { %1543 = vmatprep.subr.bf16.mxu0 %v1542_v5  ;;  %v1621_v13 = vunpack.i.h.bf16 %v1619_v9  ;;  %v1620_v17 = vunpack.i.l.bf16 %v1619_v9 }
 0x4dd   :  { %1545 = vmatpush3.bf16.msra.mxu0 %v1542_v5 }
 0x4de   :  { %v1653_v8 = vpop.eup %1652  ;;  %1548 = vmatprep.subr.msk.bf16.mxu0 %vm1918_vm2, %v1546_v6  ;;  %v1556_v19 = vpack.c.bf16 %v1621_v13, %v1620_v17 }
 0x4df   :  { %v299_v10 = vmul.f32 %v1653_v8, %v1649_v57  ;;  %v765_v22 = vpop.permute.xlu1 %764 }
 0x4e1   :  { %1463 = vmatprep.mubr.msk.f32.mxu0 %vm278_vm3, %v299_v10 }
 0x4e2   :  { %1464 = vmatmul.mubr.msk.f32.vlgmr.msra.gmra.mrb[2].mxu0 %vm278_vm3, %v300_v11 }
 0x4e3   :  { %1475 = vmatprep.mubr.msk.f32.mxu0 %vm194_vm1, %v476_v12 }
 0x4e6   :  { %1551 = vmatpush3.bf16.xpose.msk.msra.mxu0 %vm1918_vm2, %v1546_v6 }
 0x4e7   :  { %1558 = vmatprep.subr.msk.bf16.mxu0 %vm1918_vm2, %v1556_v19 }
 0x4ed   :  { %1476 = vmatmul.mubr.msk.f32.vlgmr.msra.gmra.mrb[4].mxu0 %vm194_vm1, %v478_v20 }
 0x4ee   :  { %1561 = vmatpush3.bf16.xpose.msk.msra.mxu0 %vm1918_vm2, %v1556_v19  ;;  %1494 = vmatprep.mubr.msk.f32.mxu0 %vm194_vm1, %v763_v21 }
 0x4f5   :  { %1495 = vmatmul.mubr.msk.f32.vlgmr.msra.gmra.mrb[6].mxu0 %vm194_vm1, %v765_v22 }
 0x5b5   :  { %v1465_v23 = vpop.f32.mrb[2].mxu0 }
 0x5b6   :  { %v379_v24 = vpop.f32.mrb[3].mxu0 }
 0x5b7   :  { %1468 = vmatprep.mubr.msk.f32.mxu1 %vm194_vm1, %v379_v24 }
 0x5c0   :  { %v1477_v25 = vpop.f32.mrb[4].mxu0 }
 0x5c1   :  { %v563_v26 = vadd.f32 %v1477_v25, %v1930_v43  ;;  %v557_v27 = vpop.f32.mrb[5].mxu0 }
 0x5c2   :  { %v558_v28 = vadd.f32 %v557_v27, %v1928_v41 }
 0x5c3   :  { %v569_v29 = vsel %vm278_vm3, %v563_v26, -inf }
 0x5c4   :  { %570 = vmax.xlane.f32.xlu1 %v569_v29  ;;  %v566_v31 = vsel %vm278_vm3, %v558_v28, -inf }
 0x5c5   :  { %567 = vmax.xlane.f32.xlu0 %v566_v31 }
 0x5c8   :  { %v1496_v33 = vpop.f32.mrb[6].mxu0 }
 0x5c9   :  { %v844_v36 = vpop.f32.mrb[7].mxu0  ;;  %v850_v56 = vadd.f32 %v1496_v33, %v1930_v43 }
 0x5ca   :  { %v845_v37 = vadd.f32 %v844_v36, %v1928_v41 }
 0x5cb   :  { %v856_v57 = vsel %vm278_vm3, %v850_v56, -inf }
 0x5cc   :  { %v853_v38 = vsel %vm278_vm3, %v845_v37, -inf }
 0x5d5   :  { %1623 = vrot.lane.b32.xlu1 %v1908_v35, %s1783_s7 }
 0x5d9   :  { %1628 = vrot.lane.b32.xlu1 %v1908_v35, %s1784_s8 }
 0x5dd   :  { %1049 = vrot.lane.b32.xlu1 %v1902_v34, %s1785_s9 }
 0x601   :  { %854 = vmax.xlane.f32.xlu1 %v853_v38 }
 0x612   :  { %676 = vrot.lane.b32.xlu1 %v1881_v15, %s1786_s10 }
 0x651   :  { %v571_v40 = vpop.xlane.xlu1 %570 }
 0x652   :  { %v573_v42 = vsub.f32 %v563_v26, %v571_v40  ;;  %v568_v44 = vpop.xlane.xlu0 %567 }
 0x653   :  { %v572_v45 = vsub.f32 %v558_v28, %v568_v44 }
 0x654   :  { %v576_v46 = vmul.f32 1.442695, %v573_v42 }
 0x655   :  { %v574_v47 = vmul.f32 1.442695, %v572_v45  ;;  %v1624_v48 = vpop.permute.xlu1 %1623 }
 0x656   :  { %1654 = vpow2.f32 %v576_v46  ;;  %v1626_v59 = vunpack.i.h.bf16 %v1624_v48  ;;  %v1625_v60 = vunpack.i.l.bf16 %v1624_v48 }
 0x657   :  { %1656 = vpow2.f32 %v574_v47 }
 0x658   :  { %v1552_v62 = vpack.c.bf16 %v1626_v59, %v1625_v60 }
 0x659   :  { %v1629_v49 = vpop.permute.xlu1 %1628 }
 0x65a   :  { %v1631_v34 = vunpack.i.h.bf16 %v1629_v49  ;;  %v1630_v50 = vunpack.i.l.bf16 %v1629_v49 }
 0x65c   :  { %v1566_v51 = vpack.c.bf16 %v1631_v34, %v1630_v50 }
 0x65d   :  { %v1050_v52 = vpop.permute.xlu1 %1049 }
 0x65e   :  { %1568 = vmatprep.subr.msk.bf16.mxu0 %vm1918_vm2, %v1566_v51  ;;  %1513 = vmatprep.mubr.msk.f32.mxu0 %vm194_vm1, %v1050_v52 }
 0x65f   :  { %1571 = vmatpush3.bf16.xpose.msk.msra.mxu0 %vm1918_vm2, %v1566_v51 }
 0x660   :  { %v1655_v15 = vpop.eup %1654 }
 0x661   :  { %v581_v53 = vsel %vm278_vm3, %v1655_v15, 0.0  ;;  %v1657_v54 = vpop.eup %1656 }
 0x662   :  { %582 = vadd.xlane.f32.xlu0 %v581_v53  ;;  %v578_v55 = vsel %vm278_vm3, %v1657_v54, 0.0 }
 0x666   :  { %579 = vadd.xlane.f32.xlu0 %v578_v55 }
 0x67c   :  { %389 = vrot.lane.b32.xlu0 %v1879_v14, %s1786_s10 }
 0x680   :  { %1051 = vrot.lane.b32.xlu0 %v1899_v32, %s1785_s9 }
 0x68e   :  { %v855_v4 = vpop.xlane.xlu1 %854 }
 0x68f   :  { %v859_v5 = vsub.f32 %v845_v37, %v855_v4 }
 0x691   :  { %v861_v8 = vmul.f32 1.442695, %v859_v5 }
 0x692   :  { %v677_v17 = vpop.permute.xlu1 %676 }
 0x69f   :  { %857 = vmax.xlane.f32.xlu0 %v856_v57 }
 0x6ef   :  { %v583_v39 = vpop.xlane.xlu0 %582 }
 0x6f0   :  { %1658 = vrcp.f32 %v583_v39 }
 0x6f3   :  { %v580_v58 = vpop.xlane.xlu0 %579 }
 0x6f4   :  { %1660 = vrcp.f32 %v580_v58 }
 0x6f7   :  { %v390_v61 = vpop.permute.xlu0 %389 }
 0x6f8   :  { %1466 = vmatprep.subr.mxu1 %v390_v61 }
 0x6f9   :  { %1467 = vmatpush3.msra.mxu1 %v390_v61 }
 0x6fa   :  { %1469 = vmatmul.mubr.msk.f32.vlgmr.msra.gmra.mrb[2].mxu1 %vm194_vm1, %v1465_v23  ;;  %1553 = vmatprep.subr.bf16.mxu1 %v1552_v62  ;;  %v1659_v32 = vpop.eup %1658 }
 0x6fb   :  { %v1052_v14 = vpop.permute.xlu0 %1051  ;;  %1555 = vmatpush3.bf16.msra.mxu1 %v1552_v62  ;;  %v587_v3 = vmul.f32 %v1659_v32, %v1655_v15 }
 0x6fc   :  { %1514 = vmatmul.mubr.msk.f32.vlgmr.msra.gmra.mrb[8].mxu0 %vm194_vm1, %v1052_v14  ;;  %1485 = vmatprep.subr.mxu1 %v677_v17 }
 0x6fe   :  { %v1661_v63 = vpop.eup %1660 }
 0x6ff   :  { %v586_v2 = vmul.f32 %v1661_v63, %v1657_v54 }
 0x701   :  { %1482 = vmatprep.mubr.msk.f32.mxu1 %vm278_vm3, %v586_v2 }
 0x702   :  { %1483 = vmatmul.mubr.msk.f32.vlgmr.msra.gmra.mrb[4].mxu1 %vm278_vm3, %v587_v3 }
 0x703   :  { %1486 = vmatpush3.msra.mxu1 %v677_v17 }
 0x72c   :  { %v858_v6 = vpop.xlane.xlu0 %857 }
 0x72d   :  { %v860_v7 = vsub.f32 %v850_v56, %v858_v6 }
 0x72f   :  { %v863_v9 = vmul.f32 1.442695, %v860_v7 }
 0x731   :  { %1662 = vpow2.f32 %v863_v9 }
 0x732   :  { %1664 = vpow2.f32 %v861_v8 }
 0x73b   :  { %v1663_v10 = vpop.eup %1662 }
 0x73c   :  { %v868_v11 = vsel %vm278_vm3, %v1663_v10, 0.0  ;;  %v1665_v12 = vpop.eup %1664 }
 0x73d   :  { %869 = vadd.xlane.f32.xlu0 %v868_v11  ;;  %v865_v13 = vsel %vm278_vm3, %v1665_v12, 0.0 }
 0x741   :  { %866 = vadd.xlane.f32.xlu0 %v865_v13 }
 0x757   :  { %1633 = vrot.lane.b32.xlu0 %v1908_v35, %s1787_s11 }
 0x7ca   :  { %v870_v19 = vpop.xlane.xlu0 %869 }
 0x7cb   :  { %1666 = vrcp.f32 %v870_v19 }
 0x7ce   :  { %v867_v20 = vpop.xlane.xlu0 %866 }
 0x7cf   :  { %1668 = vrcp.f32 %v867_v20  ;;  %v1515_v21 = vpop.f32.mrb[8].mxu0 }
 0x7d0   :  { %v1137_v22 = vadd.f32 %v1515_v21, %v1930_v43  ;;  %v1131_v23 = vpop.f32.mrb[9].mxu0 }
 0x7d1   :  { %v1132_v24 = vadd.f32 %v1131_v23, %v1928_v41 }
 0x7d2   :  { %v1634_v25 = vpop.permute.xlu0 %1633  ;;  %v1143_v26 = vsel %vm278_vm3, %v1137_v22, -inf }
 0x7d3   :  { %v1636_v27 = vunpack.i.h.bf16 %v1634_v25  ;;  %v1635_v28 = vunpack.i.l.bf16 %v1634_v25  ;;  %1144 = vmax.xlane.f32.xlu0 %v1143_v26  ;;  %v1140_v29 = vsel %vm278_vm3, %v1132_v24, -inf }
 0x7d4   :  { %1141 = vmax.xlane.f32.xlu1 %v1140_v29 }
 0x7d5   :  { %v1562_v31 = vpack.c.bf16 %v1636_v27, %v1635_v28  ;;  %v1484_v33 = vpop.f32.mrb[4].mxu1  ;;  %v1667_v37 = vpop.eup %1666 }
 0x7d6   :  { %v666_v36 = vpop.f32.mrb[5].mxu1  ;;  %v874_v38 = vmul.f32 %v1667_v37, %v1663_v10 }
 0x7d7   :  { %1487 = vmatprep.mubr.msk.f32.mxu1 %vm194_vm1, %v666_v36  ;;  %1563 = vmatprep.subr.bf16.mxu1 %v1562_v31 }
 0x7d8   :  { %1488 = vmatmul.mubr.msk.f32.vlgmr.msra.gmra.mrb[2].mxu1 %vm194_vm1, %v1484_v33 }
 0x7d9   :  { %v1669_v43 = vpop.eup %1668  ;;  %1565 = vmatpush3.bf16.msra.mxu1 %v1562_v31 }
 0x7da   :  { %v873_v41 = vmul.f32 %v1669_v43, %v1665_v12 }
 0x7dc   :  { %1501 = vmatprep.mubr.msk.f32.mxu1 %vm278_vm3, %v873_v41 }
 0x7dd   :  { %1502 = vmatmul.mubr.msk.f32.vlgmr.msra.gmra.mrb[6].mxu1 %vm278_vm3, %v874_v38 }
 0x860   :  { %v1145_v40 = vpop.xlane.xlu0 %1144 }
 0x861   :  { %v1147_v42 = vsub.f32 %v1137_v22, %v1145_v40  ;;  %v1142_v44 = vpop.xlane.xlu1 %1141 }
 0x862   :  { %v1146_v45 = vsub.f32 %v1132_v24, %v1142_v44 }
 0x863   :  { %v1150_v46 = vmul.f32 1.442695, %v1147_v42 }
 0x864   :  { %v1148_v47 = vmul.f32 1.442695, %v1146_v45 }
 0x865   :  { %1670 = vpow2.f32 %v1150_v46 }
 0x866   :  { %1672 = vpow2.f32 %v1148_v47 }
 0x86f   :  { %v1671_v48 = vpop.eup %1670 }
 0x870   :  { %v1673_v49 = vpop.eup %1672  ;;  %v1155_v34 = vsel %vm278_vm3, %v1671_v48, 0.0 }
 0x871   :  { %1156 = vadd.xlane.f32.xlu0 %v1155_v34  ;;  %v1152_v50 = vsel %vm278_vm3, %v1673_v49, 0.0 }
 0x872   :  { %1153 = vadd.xlane.f32.xlu1 %v1152_v50 }
 0x883   :  { %963 = vrot.lane.b32.xlu1 %v1883_v16, %s1786_s10 }
 0x887   :  { %1638 = vrot.lane.b32.xlu0 %v1908_v35, %s1788_s12  ;;  %1250 = vrot.lane.b32.xlu1 %v1887_v18, %s1786_s10 }
 0x88b   :  { %183 = vrot.lane.b32.xlu1 %v1896_v30, %s1786_s10 }
 0x8b0   :  { %v1503_v51 = vpop.f32.mrb[6].mxu1 }
 0x8b1   :  { %v953_v52 = vpop.f32.mrb[7].mxu1 }
 0x8b2   :  { %1506 = vmatprep.mubr.msk.f32.mxu1 %vm194_vm1, %v953_v52 }
 0x8fe   :  { %v1157_v15 = vpop.xlane.xlu0 %1156 }
 0x8ff   :  { %1674 = vrcp.f32 %v1157_v15  ;;  %v1154_v53 = vpop.xlane.xlu1 %1153 }
 0x900   :  { %1676 = vrcp.f32 %v1154_v53 }
 0x902   :  { %v1639_v54 = vpop.permute.xlu0 %1638 }
 0x903   :  { %v1641_v55 = vunpack.i.h.bf16 %v1639_v54  ;;  %v1640_v16 = vunpack.i.l.bf16 %v1639_v54  ;;  %v964_v56 = vpop.permute.xlu1 %963 }
 0x904   :  { %1504 = vmatprep.subr.mxu1 %v964_v56 }
 0x905   :  { %v1572_v35 = vpack.c.bf16 %v1641_v55, %v1640_v16  ;;  %1505 = vmatpush3.msra.mxu1 %v964_v56 }
 0x906   :  { %1507 = vmatmul.mubr.msk.f32.vlgmr.msra.gmra.mrb[2].mxu1 %vm194_vm1, %v1503_v51 }
 0x907   :  { %1573 = vmatprep.subr.bf16.mxu1 %v1572_v35  ;;  %v1251_v18 = vpop.permute.xlu1 %1250 }
 0x908   :  { %1575 = vmatpush3.bf16.msra.mxu1 %v1572_v35 }
 0x909   :  { %v1675_v30 = vpop.eup %1674  ;;  %1523 = vmatprep.subr.mxu1 %v1251_v18 }
 0x90a   :  { %v1677_v57 = vpop.eup %1676  ;;  %v1161_v58 = vmul.f32 %v1675_v30, %v1671_v48 }
 0x90b   :  { %v1160_v39 = vmul.f32 %v1677_v57, %v1673_v49  ;;  %v184_v61 = vpop.permute.xlu1 %183 }
 0x90c   :  { %v187_v62 = vadd.f32 %v184_v61, %v1869_v1  ;;  %v186_v14 = vadd.f32 %v184_v61, %v1867_v0 }
 0x90d   :  { %1520 = vmatprep.mubr.msk.f32.mxu1 %vm278_vm3, %v1160_v39 }
 0x90e   :  { %1521 = vmatmul.mubr.msk.f32.vlgmr.msra.gmra.mrb[8].mxu1 %vm278_vm3, %v1161_v58 }
 0x90f   :  { %1524 = vmatpush3.msra.mxu1 %v1251_v18 }
 0x9e1   :  { %v1522_v59 = vpop.f32.mrb[8].mxu1 }
 0x9e2   :  { %v1240_v60 = vpop.f32.mrb[9].mxu1 }
 0x9e3   :  { %1525 = vmatprep.mubr.msk.f32.mxu1 %vm194_vm1, %v1240_v60 }
 0x9e4   :  { %1526 = vmatmul.mubr.msk.f32.vlgmr.msra.gmra.mrb[2].mxu1 %vm194_vm1, %v1522_v59 }
 0xab7   :  { %v1527_v32 = vpop.f32.mrb[2].mxu1 }
 0xab8   :  { %v1576_v63 = vadd.f32 %v1527_v32, %v187_v62  ;;  %v1325_v2 = vpop.f32.mrb[3].mxu1 }
 0xab9   :  { %v1577_v3 = vadd.f32 %v1325_v2, %v186_v14 }
 0xaba   :  { %1337 = vst.msk [vmem:[#allocation8 + $0x8] sm:$0xff] %vm68_vm0, %v1576_v63 }
 0xabb   :  { %1336 = vst.msk [vmem:[#allocation8] sm:$0xff] %vm68_vm0, %v1577_v3 }
 0xabc   :  { %1755 = shalt.err (!%p1752_p0)
}
 0xabd   :  { %s1756_s17 = scalar_lea.hbm %s2035_s4, 256 }
 0xabe   :  { %p1757_p1 = scmp.ne.s32.totalorder %s2035_s4, %s1756_s17  ;;  %p1760_p2 = scmp.lt.u32.totalorder %s1756_s17, %s2035_s4 }
 0xac0   :  { %p1762_p3 = pnand %p1760_p2, %p1757_p1 }
 0xac2   :  { %1765 = shalt.err (!%p1762_p3)
}
 0xac3   :  { %1349 = dma.vmem_to_hbm [thread:$0]  %s1344_s13, 256, %s2035_s4, [#allocation4], %s1774_s27, %s1774_s27, %s1775_s28  }
 0xac4   :  { %1770 = dma.done.wait [#allocation4], 256  }
 0xac5   :  { %1771 = vsyncadd [#allocation4], 4294967040 }
 0xac6   :  { %1353 = vsyncpa [#allocation3], 1 }
 0xac7   :  { %1354 = vsyncpa [#allocation6], 1 }
 0xac8   :  { %1355 = vsyncpa [#allocation4], 1 }

</bundles_post_ra>
